<compile_context>
chip_gen: v7x
topology: tpu7x:2x2x1
jax: 0.10.0
libtpu: 0.0.40
codegen_flags: <defaults>
</compile_context>

<pallas_src>
import jax
import jax.numpy as jnp
import numpy as np
from jax import lax
from jax.experimental import pallas as pl
from jax.experimental.pallas import tpu as pltpu

NEG_BIG = -2.0 ** 31  # torch pads logits with -2**31 (not -inf)


def attention_kernel(lens_ref, x_ref, wq_ref, wk_ref, wv_ref, o_ref):
    """One (BB, T, D) block of batch elements per grid step.

    lens_ref : VMEM int32 (BB, 1)     valid sequence length per batch element
    x_ref    : VMEM bf16  (BB, T, D)
    w*_ref   : VMEM bf16  (D, D)      PyTorch (out, in) layout
    o_ref    : VMEM       (BB, T*D)   lane-dense output slab
    """
    BB, T, D = x_ref.shape
    x = x_ref[...]                                   # bf16 (BB, T, D)

    # Separate projections (x @ W^T, contracting the PyTorch (out, in) layout
    # directly) keep q/k/v lane-aligned at offset 0 -> no result-slice relayout.
    def proj(w_ref):
        return lax.dot_general(x, w_ref[...], (((2,), (1,)), ((), ())),
                               preferred_element_type=jnp.float32)  # (BB, T, D)

    q = proj(wq_ref).astype(jnp.bfloat16)
    k = proj(wk_ref).astype(jnp.bfloat16)
    v = proj(wv_ref).astype(jnp.bfloat16)

    # scores[b, i, j] = q[b, i] . k[b, j]  ==  Q @ K^T  (no scaling, exactly
    # like the PyTorch module).
    scores = lax.dot_general(q, k, (((2,), (2,)), ((0,), (0,))),
                             preferred_element_type=jnp.float32)    # (BB, T, T)

    key_pos = lax.broadcasted_iota(jnp.int32, (BB, T, T), 2)
    lens_b = lens_ref[...][:, :, None]               # (BB, 1, 1)
    scores = jnp.where(key_pos < lens_b, scores, NEG_BIG)

    # Softmax over keys (torch dim=2), kept in f32 (no bf16 VPU/EUP on v5e);
    # the divide goes to the EUP slot.
    m = jnp.max(scores, axis=-1, keepdims=True)
    e = jnp.exp(scores - m)
    p = e * pl.reciprocal(jnp.sum(e, axis=-1, keepdims=True), approx=True)
    # TODO(synk): if profiling at large BB shows EUP/VPU as the saturating
    # slot, transpose scores to put batch on lanes for the T=8 softmax.

    out = lax.dot_general(p.astype(jnp.bfloat16), v,
                          (((2,), (1,)), ((0,), (0,))),
                          preferred_element_type=jnp.float32)       # (BB, T, D)

    # Lane-dense store: T*D >= 128 lanes wide -> unmasked vst. The reshape
    # relayout runs on the XLU slot (idle here).
    o_ref[...] = out.reshape(BB, T * D).astype(o_ref.dtype)


def _pick_block_b(B):
    """Largest multiple-of-8 divisor of B that is <= min(B//4, 1024).

    Guarantees >= 4 grid steps (v7x dual-TC + DMA/compute overlap) while
    keeping ~7 KiB/elem * BB well under the 16 MiB v5e scoped-VMEM default.
    Falls back to the whole batch when no such divisor exists (small B).
    """
    cap = min(max(B // 4, 8), 1024)
    best = None
    for bb in range(8, cap + 1, 8):
        if B % bb == 0:
            best = bb
    return B if best is None else best


def attention_layer(inputs, lens, wq, wk, wv, *, block_b=None,
                    out_dtype=jnp.bfloat16):
    """inputs: (B, T, D) float32; lens: (B,) int; w*: (D, D) PyTorch (out, in).

    Returns (B, T, D) in out_dtype (bf16 by default; pass jnp.float32 to match
    the PyTorch output dtype exactly at the cost of ~2x output HBM traffic).
    """
    B, T, D = inputs.shape
    BB = _pick_block_b(B) if block_b is None else block_b
    assert B % BB == 0, "block_b must divide B"
    # (BB, 1) / (BB, T*D) blocks: second-to-last dim must be 8-aligned unless
    # it spans the full batch.
    assert BB == B or BB % 8 == 0, "block_b must equal B or be a multiple of 8"

    # bf16 feed for the MXU; also halves activation/weight DMA bytes.
    x_bf = inputs.astype(jnp.bfloat16)
    wq_bf = wq.astype(jnp.bfloat16)
    wk_bf = wk.astype(jnp.bfloat16)
    wv_bf = wv.astype(jnp.bfloat16)
    lens2d = lens.astype(jnp.int32).reshape(B, 1)

    out_flat = pl.pallas_call(
        attention_kernel,
        grid=(B // BB,),
        in_specs=[
            pl.BlockSpec((BB, 1), lambda b: (b, 0)),        # lens
            pl.BlockSpec((BB, T, D), lambda b: (b, 0, 0)),  # x (bf16)
            pl.BlockSpec((D, D), lambda b: (0, 0)),         # Wq (bf16)
            pl.BlockSpec((D, D), lambda b: (0, 0)),         # Wk (bf16)
            pl.BlockSpec((D, D), lambda b: (0, 0)),         # Wv (bf16)
        ],
        # Lane-dense output slab; reshaped back to (B, T, D) in HBM for free.
        out_specs=pl.BlockSpec((BB, T * D), lambda b: (b, 0)),
        out_shape=jax.ShapeDtypeStruct((B, T * D), out_dtype),
        compiler_params=pltpu.CompilerParams(
            dimension_semantics=("parallel",)),
        # TODO(synk): for large T, replace the materialized (T, T) scores with
        # a KV-tiled online-softmax loop (VMEM grows ~T^2*4B per element).
    )(lens2d, x_bf, wq_bf, wk_bf, wv_bf)

    return out_flat.reshape(B, T, D)


def attention_reference(inputs, lens, wq, wk, wv):
    """Plain-JAX (f32) replica of the PyTorch forward, for verification."""
    Q = inputs @ wq.T
    K = inputs @ wk.T
    V = inputs @ wv.T
    scores = jnp.einsum("btd,bsd->bts", Q, K)
    T = inputs.shape[1]
    mask = (jnp.arange(T)[None, :] < lens[:, None])[:, None, :]   # (B, 1, T)
    scores = jnp.where(mask, scores, NEG_BIG)
    p = jax.nn.softmax(scores, axis=-1)
    return p @ V


if __name__ == "__main__":
    hidden_dim = 32
    is_bi_rnn = False
    D = hidden_dim * 2 if is_bi_rnn else hidden_dim
    T = 8

    key = jax.random.PRNGKey(0)
    kx, kq, kk, kv, kl = jax.random.split(key, 5)

    bound = 1.0 / np.sqrt(D)  # deterministic stand-in for nn.Linear default init
    wq = jax.random.uniform(kq, (D, D), jnp.float32, -bound, bound)
    wk = jax.random.uniform(kk, (D, D), jnp.float32, -bound, bound)
    wv = jax.random.uniform(kv, (D, D), jnp.float32, -bound, bound)

    # --- case 1: module-sized batch (B=2 -> single grid step, BB=B) ---------
    B = 2
    inputs = jax.random.normal(kx, (B, T, D), dtype=jnp.float32)
    lens = jnp.array([T, 5], dtype=jnp.int32)  # max(lens) == T, as the module assumes

    out = jax.block_until_ready(attention_layer(inputs, lens, wq, wk, wv))
    ref = attention_reference(inputs, lens, wq, wk, wv)
    # bf16 MXU operands / bf16 output (f32 accumulation) -> loosened tolerance.
    np.testing.assert_allclose(np.asarray(out, dtype=np.float32),
                               np.asarray(ref), rtol=5e-2, atol=5e-2)

    # --- case 2: multi-step grid path (B=32 -> BB=8, grid=(4,)) -------------
    B2 = 32
    inputs2 = jax.random.normal(kx, (B2, T, D), dtype=jnp.float32)
    lens2 = jax.random.randint(kl, (B2,), 1, T + 1).astype(jnp.int32)
    lens2 = lens2.at[0].set(T)  # keep max(lens) == T as the module assumes

    out2 = jax.block_until_ready(attention_layer(inputs2, lens2, wq, wk, wv))
    ref2 = attention_reference(inputs2, lens2, wq, wk, wv)
    np.testing.assert_allclose(np.asarray(out2, dtype=np.float32),
                               np.asarray(ref2), rtol=5e-2, atol=5e-2)

    print("KERNEL_OK")
</pallas_src>

<mosaic_0001>
module attributes {stable_mosaic.version = 11 : i64} {
  func.func @attention_kernel(%arg0: i32, %arg1: memref<2x1xi32, #tpu.memory_space<vmem>>, %arg2: memref<2x8x32xbf16, #tpu.memory_space<vmem>>, %arg3: memref<32x32xbf16, #tpu.memory_space<vmem>>, %arg4: memref<32x32xbf16, #tpu.memory_space<vmem>>, %arg5: memref<32x32xbf16, #tpu.memory_space<vmem>>, %arg6: memref<2x256xbf16, #tpu.memory_space<vmem>>) attributes {dimension_semantics = [#tpu.dimension_semantics<parallel>], iteration_bounds = array<i64: 1>, scalar_prefetch = 0 : i64, scratch_operands = 0 : i64, tpu.core_type = #tpu.core_type<tc>, window_params = [{transform_indices = @transform_0, window_bounds = array<i64: 2, 1>}, {transform_indices = @transform_1, window_bounds = array<i64: 2, 8, 32>}, {pipeline_mode = #tpu.pipeline_mode<synchronous>, transform_indices = @transform_2, window_bounds = array<i64: 32, 32>}, {pipeline_mode = #tpu.pipeline_mode<synchronous>, transform_indices = @transform_3, window_bounds = array<i64: 32, 32>}, {pipeline_mode = #tpu.pipeline_mode<synchronous>, transform_indices = @transform_4, window_bounds = array<i64: 32, 32>}, {transform_indices = @transform_5, window_bounds = array<i64: 2, 256>}]} {
    %c0 = arith.constant 0 : index
    %c0_0 = arith.constant 0 : index
    %c0_1 = arith.constant 0 : index
    %0 = vector.load %arg2[%c0, %c0_0, %c0_1] : memref<2x8x32xbf16, #tpu.memory_space<vmem>>, vector<2x8x32xbf16>
    %c0_2 = arith.constant 0 : index
    %c0_3 = arith.constant 0 : index
    %1 = vector.load %arg3[%c0_2, %c0_3] : memref<32x32xbf16, #tpu.memory_space<vmem>>, vector<32x32xbf16>
    %cst = arith.constant dense<0.000000e+00> : vector<2x8x32xf32>
    %2 = tpu.matmul %0, %1, %cst {dimension_numbers = #tpu.dot_dimension_numbers<[2], [1], [0, 1], [0], [0, 0, 0, 1, 1, 0], [], []>} : vector<2x8x32xbf16>, vector<32x32xbf16>, vector<2x8x32xf32> -> vector<2x8x32xf32>
    %3 = arith.truncf %2 : vector<2x8x32xf32> to vector<2x8x32xbf16>
    %c0_4 = arith.constant 0 : index
    %c0_5 = arith.constant 0 : index
    %4 = vector.load %arg4[%c0_4, %c0_5] : memref<32x32xbf16, #tpu.memory_space<vmem>>, vector<32x32xbf16>
    %cst_6 = arith.constant dense<0.000000e+00> : vector<2x8x32xf32>
    %5 = tpu.matmul %0, %4, %cst_6 {dimension_numbers = #tpu.dot_dimension_numbers<[2], [1], [0, 1], [0], [0, 0, 0, 1, 1, 0], [], []>} : vector<2x8x32xbf16>, vector<32x32xbf16>, vector<2x8x32xf32> -> vector<2x8x32xf32>
    %6 = arith.truncf %5 : vector<2x8x32xf32> to vector<2x8x32xbf16>
    %c0_7 = arith.constant 0 : index
    %c0_8 = arith.constant 0 : index
    %7 = vector.load %arg5[%c0_7, %c0_8] : memref<32x32xbf16, #tpu.memory_space<vmem>>, vector<32x32xbf16>
    %cst_9 = arith.constant dense<0.000000e+00> : vector<2x8x32xf32>
    %8 = tpu.matmul %0, %7, %cst_9 {dimension_numbers = #tpu.dot_dimension_numbers<[2], [1], [0, 1], [0], [0, 0, 0, 1, 1, 0], [], []>} : vector<2x8x32xbf16>, vector<32x32xbf16>, vector<2x8x32xf32> -> vector<2x8x32xf32>
    %9 = arith.truncf %8 : vector<2x8x32xf32> to vector<2x8x32xbf16>
    %cst_10 = arith.constant dense<0.000000e+00> : vector<2x8x8xf32>
    %10 = tpu.matmul %3, %6, %cst_10 {dimension_numbers = #tpu.dot_dimension_numbers<[2], [2], [1], [1], [0, 0, 0, 1, 1, 1], [0], [0]>} : vector<2x8x32xbf16>, vector<2x8x32xbf16>, vector<2x8x8xf32> -> vector<2x8x8xf32>
    %11 = tpu.iota {dimensions = array<i32: 2>} : vector<2x8x8xi32>
    %c0_11 = arith.constant 0 : index
    %c0_12 = arith.constant 0 : index
    %12 = vector.load %arg1[%c0_11, %c0_12] : memref<2x1xi32, #tpu.memory_space<vmem>>, vector<2x1xi32>
    %13 = vector.shape_cast %12 : vector<2x1xi32> to vector<2x1x1xi32>
    %14 = vector.broadcast %13 : vector<2x1x1xi32> to vector<2x8x8xi32>
    %15 = arith.cmpi slt, %11, %14 : vector<2x8x8xi32>
    %cst_13 = arith.constant -2.14748365E+9 : f32
    %16 = vector.broadcast %cst_13 : f32 to vector<2x8x8xf32>
    %17 = arith.select %15, %10, %16 : vector<2x8x8xi1>, vector<2x8x8xf32>
    %cst_14 = arith.constant dense<0xFF800000> : vector<2x8xf32>
    %18 = vector.multi_reduction <maximumf>, %17, %cst_14 [2] : vector<2x8x8xf32> to vector<2x8xf32>
    %19 = vector.shape_cast %18 : vector<2x8xf32> to vector<2x8x1xf32>
    %20 = vector.broadcast %19 : vector<2x8x1xf32> to vector<2x8x8xf32>
    %21 = arith.subf %17, %20 : vector<2x8x8xf32>
    %22 = math.exp %21 : vector<2x8x8xf32>
    %cst_15 = arith.constant dense<0.000000e+00> : vector<2x8xf32>
    %23 = vector.multi_reduction <add>, %22, %cst_15 [2] : vector<2x8x8xf32> to vector<2x8xf32>
    %24 = vector.shape_cast %23 : vector<2x8xf32> to vector<2x8x1xf32>
    %25 = tpu.reciprocal %24 {approx = true} : vector<2x8x1xf32> -> vector<2x8x1xf32>
    %26 = vector.broadcast %25 : vector<2x8x1xf32> to vector<2x8x8xf32>
    %27 = arith.mulf %22, %26 : vector<2x8x8xf32>
    %28 = arith.truncf %27 : vector<2x8x8xf32> to vector<2x8x8xbf16>
    %cst_16 = arith.constant dense<0.000000e+00> : vector<2x8x32xf32>
    %29 = tpu.matmul %28, %9, %cst_16 {dimension_numbers = #tpu.dot_dimension_numbers<[2], [1], [1], [2], [0, 0, 0, 1, 1, 2], [0], [0]>} : vector<2x8x8xbf16>, vector<2x8x32xbf16>, vector<2x8x32xf32> -> vector<2x8x32xf32>
    %30 = vector.shape_cast %29 : vector<2x8x32xf32> to vector<2x256xf32>
    %31 = arith.truncf %30 : vector<2x256xf32> to vector<2x256xbf16>
    %c0_17 = arith.constant 0 : index
    %c0_18 = arith.constant 0 : index
    %32 = vector.load %arg6[%c0_17, %c0_18] : memref<2x256xbf16, #tpu.memory_space<vmem>>, vector<2x256xbf16>
    tpu.vector_store %arg6[%c0_17, %c0_18], %31 {strides = array<i32>} : memref<2x256xbf16, #tpu.memory_space<vmem>>, vector<2x256xbf16>,
    return
  }
  func.func @transform_0(%arg0: i32) -> (i32, i32) {
    %c0_i32 = arith.constant 0 : i32
    %c0_i32_0 = arith.constant 0 : i32
    return %arg0, %c0_i32 : i32, i32
  }
  func.func @transform_1(%arg0: i32) -> (i32, i32, i32) {
    %c0_i32 = arith.constant 0 : i32
    %c0_i32_0 = arith.constant 0 : i32
    %c0_i32_1 = arith.constant 0 : i32
    return %arg0, %c0_i32, %c0_i32_0 : i32, i32, i32
  }
  func.func @transform_2(%arg0: i32) -> (i32, i32) {
    %c0_i32 = arith.constant 0 : i32
    %c0_i32_0 = arith.constant 0 : i32
    %c0_i32_1 = arith.constant 0 : i32
    return %c0_i32, %c0_i32_0 : i32, i32
  }
  func.func @transform_3(%arg0: i32) -> (i32, i32) {
    %c0_i32 = arith.constant 0 : i32
    %c0_i32_0 = arith.constant 0 : i32
    %c0_i32_1 = arith.constant 0 : i32
    return %c0_i32, %c0_i32_0 : i32, i32
  }
  func.func @transform_4(%arg0: i32) -> (i32, i32) {
    %c0_i32 = arith.constant 0 : i32
    %c0_i32_0 = arith.constant 0 : i32
    %c0_i32_1 = arith.constant 0 : i32
    return %c0_i32, %c0_i32_0 : i32, i32
  }
  func.func @transform_5(%arg0: i32) -> (i32, i32) {
    %c0_i32 = arith.constant 0 : i32
    %c0_i32_0 = arith.constant 0 : i32
    return %arg0, %c0_i32 : i32, i32
  }
}

</mosaic_0001>

<bundles_post_ra>
// kernel: tpu_custom_call.1
= control target key start
LH: loop header
LB: loop body
LE: loop exit
PB: predicated region body
PF: predicated region fallthrough
CT: control target
= control target key end

     0   :  { %10 = vsyncpa [#allocation3], 0  ;;  %s1052_s0 = inlined_call_operand.vmem [shape: s32[2,1], index: 0, kind: input, shape index: {}]   ;;  %s1053_s1 = inlined_call_operand.hbm [shape: bf16[2,8,32], index: 1, kind: input, shape index: {}]   ;;  %s1054_s2 = inlined_call_operand.hbm [shape: bf16[32,32], index: 2, kind: input, shape index: {}]   ;;  %s1055_s3 = inlined_call_operand.hbm [shape: bf16[32,32], index: 3, kind: input, shape index: {}]   ;;  %s1056_s4 = inlined_call_operand.vmem [shape: bf16[32,32], index: 4, kind: input, shape index: {}]   ;;  %s1057_s5 = inlined_call_operand.hbm [shape: bf16[2,256], index: 5, kind: output, shape index: {}]  }
   0x1   :  { %11 = vsyncpa [#allocation6], 0 }
   0x2   :  { %12 = vsyncpa [#allocation4], 0  ;;  %s872_s18 = smov [#allocation5]   ;;  %s873_s20 = smov [#allocation2]  }
   0x3   :  { %s32_s19 = sshll.u32 %s872_s18, 4  ;;  %s20_s21 = sshll.u32 %s873_s20, 4  ;;  %s33_s19 = int_to_ptr.vmem [resolvable:$true] %s32_s19  ;;  %s916_s21 = int_to_ptr.vmem [resolvable:$true] %s20_s21 }
   0x4   :  { %s778_s24 = scalar_lea.hbm %s1054_s2, 256 }
   0x5   :  { %p779_p0 = scmp.ne.s32.totalorder %s1054_s2, %s778_s24  ;;  %p782_p1 = scmp.lt.u32.totalorder %s778_s24, %s1054_s2 }
   0x7   :  { %p784_p2 = pnand %p782_p1, %p779_p0 }
   0x9   :  { %787 = shalt.err (!%p784_p2)
}
   0xa   :  { %s788_s29 = scalar_lea.vmem %s33_s19, 256  ;;  %p793_p4 = scmp.lt.s32.totalorder %s33_s19, %s33_s19 }
   0xb   :  { %p789_p3 = scmp.ne.s32.totalorder %s33_s19, %s788_s29  ;;  %p794_p5 = scmp.lt.s32.totalorder %s788_s29, %s788_s29 }
   0xd   :  { %p795_p6 = por %p794_p5, %p793_p4 }
   0xf   :  { %p796_p7 = pnand %p795_p6, %p789_p3 }
  0x11   :  { %799 = shalt.err (!%p796_p7)
}
  0x12   :  { %s874_s30 = smov 64   ;;  %s875_s6 = smov 4  }
  0x13   :  { %38 = dma.hbm_to_vmem [thread:$0]  %s1054_s2, 256, %s33_s19, [#allocation6], %s874_s30, %s874_s30, %s875_s6  }
  0x14   :  { %s800_s11 = scalar_lea.hbm %s1053_s1, 128 }
  0x15   :  { %p801_p8 = scmp.ne.s32.totalorder %s1053_s1, %s800_s11  ;;  %p804_p9 = scmp.lt.u32.totalorder %s800_s11, %s1053_s1 }
  0x17   :  { %p806_p10 = pnand %p804_p9, %p801_p8 }
  0x19   :  { %809 = shalt.err (!%p806_p10)
}
  0x1a   :  { %s810_s16 = scalar_lea.vmem %s916_s21, 128  ;;  %p815_p12 = scmp.lt.s32.totalorder %s916_s21, %s916_s21 }
  0x1b   :  { %p811_p11 = scmp.ne.s32.totalorder %s916_s21, %s810_s16  ;;  %p816_p13 = scmp.lt.s32.totalorder %s810_s16, %s810_s16 }
  0x1d   :  { %p817_p0 = por %p816_p13, %p815_p12 }
  0x1f   :  { %p818_p1 = pnand %p817_p0, %p811_p11 }
  0x21   :  { %821 = shalt.err (!%p818_p1)
}
  0x22   :  { %26 = dma.hbm_to_vmem [thread:$0]  %s1053_s1, 128, %s916_s21, [#allocation3], %s874_s30, %s874_s30, %s875_s6  }
  0x23   :  { %s876_s18 = smov [#allocation7]   ;;  %s822_s23 = scalar_lea.hbm %s1055_s3, 256 }
  0x24   :  { %s44_s19 = sshll.u32 %s876_s18, 4  ;;  %p823_p2 = scmp.ne.s32.totalorder %s1055_s3, %s822_s23  ;;  %s45_s19 = int_to_ptr.vmem [resolvable:$true] %s44_s19 }
  0x25   :  { %p826_p3 = scmp.lt.u32.totalorder %s822_s23, %s1055_s3 }
  0x27   :  { %p828_p4 = pnand %p826_p3, %p823_p2 }
  0x29   :  { %831 = shalt.err (!%p828_p4)
}
  0x2a   :  { %s832_s28 = scalar_lea.vmem %s45_s19, 256  ;;  %p837_p6 = scmp.lt.s32.totalorder %s45_s19, %s45_s19 }
  0x2b   :  { %p833_p5 = scmp.ne.s32.totalorder %s45_s19, %s832_s28  ;;  %p838_p7 = scmp.lt.s32.totalorder %s832_s28, %s832_s28 }
  0x2d   :  { %p839_p8 = por %p838_p7, %p837_p6 }
  0x2f   :  { %p840_p9 = pnand %p839_p8, %p833_p5 }
  0x31   :  { %843 = shalt.err (!%p840_p9)
}
  0x32   :  { %50 = dma.hbm_to_vmem [thread:$0]  %s1055_s3, 256, %s45_s19, [#allocation6], %s874_s30, %s874_s30, %s875_s6  }
  0x33   :  { %866 = dma.done.wait [#allocation3], 128  }
  0x34   :  { %867 = vsyncadd [#allocation3], 4294967168 }
  0x35   :  { %868 = dma.done.wait [#allocation6], 512  }
  0x36   :  { %869 = vsyncadd [#allocation6], 4294966784  ;;  %v877_v0 = vmov 0.0   ;;  %vm878_vm0 = vmmov 0   ;;  %vm84_vm1 = vcmask 261120   ;;  %v763_v1 = vld [vmem:[#allocation7] sm:$0xff]   ;;  %v355_v10 = vlaneseq }
  0x37   :  { %693 = vmatprep.subr.bf16.mxu1 %v877_v0  ;;  %685 = vmatprep.subr.bf16.mxu0 %v877_v0  ;;  %v764_v2 = vld [vmem:[#allocation5] sm:$0xff]   ;;  %v152_v3 = vsel %vm84_vm1, %v763_v1, 0  ;;  %v765_v5 = vld [vmem:[#allocation7 + $0x8] sm:$0xff]   ;;  %v766_v6 = vld [vmem:[#allocation5 + $0x8] sm:$0xff]   ;;  %v879_v11 = vmov 0   ;;  %vm398_vm3 = vcmask 64512  }
  0x38   :  { %697 = vmatprep.mubr.msk.bf16.mxu1 %vm878_vm0, %v877_v0  ;;  %689 = vmatprep.mubr.msk.bf16.mxu0 %vm878_vm0, %v877_v0  ;;  %v89_v4 = vsel %vm84_vm1, %v764_v2, 0  ;;  %v155_v7 = vsel %vm84_vm1, %v765_v5, 0  ;;  %v92_v8 = vsel %vm84_vm1, %v766_v6, 0  ;;  %v767_v9 = vld [vmem:[#allocation2] sm:$0xff]   ;;  %v880_v12 = vmov 1966171168  }
  0x39   :  { %694 = vmatpush3.bf16.xpose.msra.mxu1 %v152_v3  ;;  %686 = vmatpush3.bf16.xpose.msra.mxu0 %v89_v4  ;;  %v367_v13 = vunpack.c.l.s4 %v880_v12  ;;  %v988_v14 = vshrl.u32 %v355_v10, 7  ;;  %v663_v15 = vld.sshfl [vmem:[%s1052_s0] sm:$0x11 pattern:$0x75316420]  ;;  %v769_v40 = vld [vmem:[%s1056_s4 + $0x8] sm:$0xff]  }
  0x3a   :  { %695 = vmatprep.subr.bf16.mxu1 %v877_v0  ;;  %687 = vmatprep.subr.bf16.mxu0 %v877_v0  ;;  %v365_v17 = vcombine.high %v663_v15, %v663_v15  ;;  %v768_v38 = vld [vmem:[%s1056_s4] sm:$0xff]   ;;  %v218_v41 = vsel %vm84_vm1, %v769_v40, 0  ;;  %v356_v42 = vand.u32 127, %v355_v10  ;;  %vm426_vm5 = vcmask 1043456   ;;  %s883_s4 = smov 32   ;;  %s884_s9 = smov 96  }
  0x3b   :  { %747 = vset.pattern.permute.xlu0 %v879_v11  ;;  %v368_v16 = vunpack.c.0.s8 %v367_v13  ;;  %v382_v19 = vsub.s32 0, %v988_v14  ;;  %v215_v39 = vsel %vm84_vm1, %v768_v38, 0  ;;  %vm607_vm6 = vcmask 523264  }
  0x3c   :  { %vm609_vm7 = vcmask 785408  }
  0x3d   :  { %v994_v18 = vsub.s32 %v368_v16, %v988_v14 }
  0x3f   :  { %v372_v20 = vrot.slane %v663_v15, %v994_v18  ;;  %v379_v21 = vrot.slane %v365_v17, %v994_v18 }
  0x41   :  { %696 = vmatpush3.bf16.xpose.msra.mxu1 %v155_v7  ;;  %688 = vmatpush3.bf16.xpose.msra.mxu0 %v92_v8  ;;  %v383_v22 = vrot.slane %v372_v20, %v382_v19  ;;  %v387_v23 = vrot.slane %v379_v21, %v382_v19 }
  0x42   :  { %709 = vmatprep.subr.bf16.mxu1 %v877_v0  ;;  %701 = vmatprep.subr.bf16.mxu0 %v877_v0 }
  0x43   :  { %389 = vperm.xlu0 %747, %v383_v22   ;;  %v881_v22 = vmov 1983009808  }
  0x47   :  { %392 = vperm.xlu0 %747, %v387_v23   ;;  %v518_v23 = vunpack.c.l.s4 %v881_v22 }
  0x48   :  { %698 = vmatmul.mubr.msk.bf16.vlgmr.msra.gmra.mrb[0].mxu1 %vm84_vm1, %v767_v9  ;;  %690 = vmatmul.mubr.msk.bf16.vlgmr.msra.gmra.mrb[0].mxu0 %vm84_vm1, %v767_v9 }
  0x49   :  { %711 = vmatprep.mubr.msk.bf16.mxu1 %vm878_vm0, %v877_v0  ;;  %705 = vmatprep.mubr.msk.bf16.mxu0 %vm878_vm0, %v877_v0 }
  0x4a   :  { %702 = vmatpush3.bf16.xpose.msra.mxu0 %v215_v39 }
  0x4b   :  { %703 = vmatprep.subr.bf16.mxu0 %v877_v0 }
  0x52   :  { %704 = vmatpush3.bf16.xpose.msra.mxu0 %v218_v41 }
  0x53   :  { %721 = vmatprep.subr.bf16.mxu0 %v877_v0 }
  0x59   :  { %706 = vmatmul.mubr.msk.bf16.vlgmr.msra.gmra.mrb[4].mxu0 %vm84_vm1, %v767_v9 }
  0x5a   :  { %723 = vmatprep.mubr.msk.bf16.mxu0 %vm878_vm0, %v877_v0 }
  0xc2   :  { %v390_v43 = vpop.permute.xlu0 %389 }
  0xc3   :  { %vm394_vm2 = vcmp.lt.s32.totalorder %v356_v42, %v390_v43 }
  0xc6   :  { %v393_v50 = vpop.permute.xlu0 %392 }
  0xc7   :  { %vm395_vm4 = vcmp.lt.s32.totalorder %v356_v42, %v393_v50 }
 0x11b   :  { %v191_v24 = vpop.f32.mrb[0].mxu1  ;;  %v128_v27 = vpop.f32.mrb[0].mxu0 }
 0x11c   :  { %v198_v25 = vpack.c.bf16 %v191_v24, %v191_v24  ;;  %v699_v26 = vpop.f32.mrb[1].mxu1  ;;  %v691_v29 = vpop.f32.mrb[1].mxu0  ;;  %v135_v35 = vpack.c.bf16 %v128_v27, %v128_v27  ;;  %v882_v27 = vmov 1934713408  }
 0x11d   :  { %v194_v28 = vpop.f32.mrb[2].mxu1  ;;  %v131_v32 = vpop.f32.mrb[2].mxu0 }
 0x11e   :  { %v267_v30 = vsel %vm84_vm1, %v198_v25, 0  ;;  %v700_v31 = vpop.f32.mrb[3].mxu1  ;;  %v692_v33 = vpop.f32.mrb[3].mxu0  ;;  %v199_v34 = vpack.c.bf16 %v194_v28, %v194_v28  ;;  %v136_v37 = vpack.c.bf16 %v131_v32, %v131_v32  ;;  %v519_v25 = vunpack.c.0.s8 %v518_v23 }
 0x11f   :  { %710 = vmatpush3.bf16.xpose.msra.mxu1 %v267_v30  ;;  %v549_v28 = vunpack.c.l.s4 %v882_v27 }
 0x120   :  { %715 = vmatprep.subr.bf16.mxu1 %v877_v0  ;;  %v313_v36 = vsel %vm84_vm1, %v199_v34, 0  ;;  %v522_v31 = vsub.s32 %v519_v25, %v988_v14 }
 0x121   :  { %v550_v32 = vunpack.c.0.s8 %v549_v28 }
 0x123   :  { %v553_v38 = vsub.s32 %v550_v32, %v988_v14 }
 0x126   :  { %712 = vmatmul.mubr.msk.bf16.vlgmr.msra.gmra.mrb[4].mxu1 %vm84_vm1, %v135_v35 }
 0x127   :  { %716 = vmatpush3.bf16.xpose.msra.mxu1 %v313_v36  ;;  %717 = vmatprep.mubr.msk.bf16.mxu1 %vm878_vm0, %v877_v0 }
 0x128   :  { %727 = vmatprep.subr.bf16.mxu1 %v877_v0 }
 0x12c   :  { %v254_v4 = vpop.f32.mrb[4].mxu0 }
 0x12d   :  { %v261_v5 = vpack.c.bf16 %v254_v4, %v254_v4  ;;  %v707_v6 = vpop.f32.mrb[5].mxu0 }
 0x12e   :  { %718 = vmatmul.mubr.msk.bf16.vlgmr.msra.gmra.mrb[8].mxu1 %vm84_vm1, %v136_v37  ;;  %v257_v8 = vpop.f32.mrb[6].mxu0 }
 0x12f   :  { %729 = vmatprep.mubr.msk.bf16.mxu1 %vm878_vm0, %v877_v0  ;;  %v428_v7 = vsel %vm426_vm5, %v261_v5, 0  ;;  %v708_v9 = vpop.f32.mrb[7].mxu0  ;;  %v262_v10 = vpack.c.bf16 %v257_v8, %v257_v8 }
 0x130   :  { %722 = vmatpush3.bf16.msra.mxu0 %v428_v7 }
 0x131   :  { %v474_v11 = vsel %vm426_vm5, %v262_v10, 0 }
 0x132   :  { %728 = vmatpush3.bf16.msra.mxu1 %v474_v11 }
 0x1f9   :  { %v303_v44 = vpop.f32.mrb[4].mxu1 }
 0x1fa   :  { %v396_v45 = vsel %vm394_vm2, %v303_v44, -2.1474836e+09  ;;  %v713_v46 = vpop.f32.mrb[5].mxu1 }
 0x1fb   :  { %v306_v47 = vpop.f32.mrb[6].mxu1  ;;  %v399_v48 = vsel %vm398_vm3, %v396_v45, -inf }
 0x1fc   :  { %400 = vmax.xlane.f32.xlu1 %v399_v48  ;;  %v714_v49 = vpop.f32.mrb[7].mxu1 }
 0x201   :  { %v349_v51 = vpop.f32.mrb[8].mxu1 }
 0x202   :  { %v397_v52 = vsel %vm395_vm4, %v349_v51, -2.1474836e+09  ;;  %v719_v53 = vpop.f32.mrb[9].mxu1 }
 0x203   :  { %v352_v54 = vpop.f32.mrb[10].mxu1  ;;  %v402_v55 = vsel %vm398_vm3, %v397_v52, -inf }
 0x204   :  { %403 = vmax.xlane.f32.xlu1 %v402_v55  ;;  %v720_v56 = vpop.f32.mrb[11].mxu1 }
 0x289   :  { %v401_v57 = vpop.xlane.xlu1 %400 }
 0x28a   :  { %v405_v58 = vsub.f32 %v396_v45, %v401_v57 }
 0x28c   :  { %v407_v59 = vmul.f32 1.442695, %v405_v58 }
 0x28e   :  { %770 = vpow2.f32 %v407_v59 }
 0x291   :  { %v404_v60 = vpop.xlane.xlu1 %403 }
 0x292   :  { %v406_v61 = vsub.f32 %v397_v52, %v404_v60 }
 0x294   :  { %v409_v62 = vmul.f32 1.442695, %v406_v61 }
 0x296   :  { %772 = vpow2.f32 %v409_v62 }
 0x298   :  { %v771_v63 = vpop.eup %770 }
 0x299   :  { %v411_v1 = vsel %vm398_vm3, %v771_v63, 0.0 }
 0x29a   :  { %412 = vadd.xlane.f32.xlu0 %v411_v1 }
 0x2a0   :  { %v773_v2 = vpop.eup %772 }
 0x2a1   :  { %v414_v3 = vsel %vm398_vm3, %v773_v2, 0.0 }
 0x2a2   :  { %415 = vadd.xlane.f32.xlu1 %v414_v3 }
 0x327   :  { %v413_v12 = vpop.xlane.xlu0 %412 }
 0x328   :  { %774 = vrcp.f32 %v413_v12 }
 0x32f   :  { %v416_v13 = vpop.xlane.xlu1 %415 }
 0x330   :  { %776 = vrcp.f32 %v416_v13 }
 0x332   :  { %v775_v15 = vpop.eup %774 }
 0x333   :  { %v419_v16 = vmul.f32 %v775_v15, %v771_v63 }
 0x335   :  { %v421_v17 = vpack.c.bf16 %v419_v16, %v419_v16 }
 0x337   :  { %724 = vmatmul.mubr.msk.bf16.vlgmr.msra.gmra.mrb[8].mxu0 %vm398_vm3, %v421_v17 }
 0x33a   :  { %v777_v19 = vpop.eup %776 }
 0x33b   :  { %v420_v20 = vmul.f32 %v777_v19, %v773_v2 }
 0x33d   :  { %v422_v21 = vpack.c.bf16 %v420_v20, %v420_v20 }
 0x33f   :  { %730 = vmatmul.mubr.msk.bf16.vlgmr.msra.gmra.mrb[12].mxu1 %vm398_vm3, %v422_v21 }
 0x40a   :  { %v464_v24 = vpop.f32.mrb[8].mxu0 }
 0x40b   :  { %v725_v26 = vpop.f32.mrb[9].mxu0  ;;  %v516_v33 = vcombine.high %v464_v24, %v877_v0  ;;  %v523_v35 = vrot.slane %v464_v24, %v522_v31 }
 0x40c   :  { %v467_v29 = vpop.f32.mrb[10].mxu0 }
 0x40d   :  { %v726_v30 = vpop.f32.mrb[11].mxu0  ;;  %v530_v41 = vrot.slane %v516_v33, %v522_v31 }
 0x412   :  { %v510_v34 = vpop.f32.mrb[12].mxu1 }
 0x413   :  { %v531_v36 = vcombine.high %v510_v34, %v877_v0  ;;  %v538_v37 = vrot.slane %v510_v34, %v522_v31  ;;  %v731_v39 = vpop.f32.mrb[13].mxu1 }
 0x414   :  { %v513_v40 = vpop.f32.mrb[14].mxu1 }
 0x415   :  { %v545_v42 = vrot.slane %v531_v36, %v522_v31  ;;  %v546_v43 = vcombine.low %v523_v35, %v538_v37  ;;  %v547_v44 = vcombine.high %v523_v35, %v538_v37  ;;  %v732_v45 = vpop.f32.mrb[15].mxu1 }
 0x417   :  { %v562_v46 = vcombine.low %v530_v41, %v545_v42  ;;  %v561_v47 = vrot.slane %v547_v44, %v553_v38  ;;  %v563_v48 = vcombine.high %v530_v41, %v545_v42  ;;  %v554_v49 = vrot.slane %v546_v43, %v553_v38 }
 0x419   :  { %v570_v50 = vrot.slane %v562_v46, %v553_v38  ;;  %v577_v51 = vrot.slane %v563_v48, %v553_v38  ;;  %v579_v52 = vcombine.high %v561_v47, %v877_v0  ;;  %v578_v55 = vcombine.high %v554_v49, %v877_v0 }
 0x41b   :  { %v748_v53 = vpack.i.bf16 %v577_v51, %v561_v47  ;;  %v581_v54 = vcombine.high %v577_v51, %v877_v0  ;;  %v580_v14 = vcombine.high %v570_v50, %v877_v0 }
 0x41d   :  { %749 = vrot.lane.b32.xlu1 %v748_v53, %s874_s30  ;;  %v758_v56 = vpack.i.bf16 %v581_v54, %v579_v52  ;;  %v753_v57 = vpack.i.bf16 %v580_v14, %v578_v55  ;;  %s885_s30 = smov [#allocation8]  }
 0x41e   :  { %s641_s10 = sshll.u32 %s885_s30, 4  ;;  %s642_s10 = int_to_ptr.vmem [resolvable:$true] %s641_s10 }
 0x41f   :  { %s844_s11 = scalar_lea.vmem %s642_s10, 32  ;;  %p849_p11 = scmp.lt.s32.totalorder %s642_s10, %s642_s10 }
 0x420   :  { %p845_p10 = scmp.ne.s32.totalorder %s642_s10, %s844_s11  ;;  %p850_p12 = scmp.lt.s32.totalorder %s844_s11, %s844_s11 }
 0x421   :  { %754 = vrot.lane.b32.xlu1 %v753_v57, %s883_s4 }
 0x422   :  { %p851_p13 = por %p850_p12, %p849_p11 }
 0x424   :  { %p852_p0 = pnand %p851_p13, %p845_p10 }
 0x425   :  { %759 = vrot.lane.b32.xlu1 %v758_v56, %s884_s9 }
 0x48f   :  { %v750_v58 = vpop.permute.xlu1 %749 }
 0x490   :  { %v752_v1 = vunpack.i.h.bf16 %v750_v58  ;;  %v751_v2 = vunpack.i.l.bf16 %v750_v58 }
 0x493   :  { %v755_v59 = vpop.permute.xlu1 %754 }
 0x494   :  { %v757_v60 = vunpack.i.h.bf16 %v755_v59  ;;  %v756_v61 = vunpack.i.l.bf16 %v755_v59 }
 0x496   :  { %v611_v62 = vsel %vm84_vm1, %v570_v50, %v757_v60  ;;  %v606_v63 = vsel %vm84_vm1, %v554_v49, %v756_v61 }
 0x497   :  { %v760_v3 = vpop.permute.xlu1 %759  ;;  %v608_v5 = vsel %vm607_vm6, %v606_v63, %v751_v2  ;;  %v612_v6 = vsel %vm607_vm6, %v611_v62, %v752_v1 }
 0x498   :  { %v762_v0 = vunpack.i.h.bf16 %v760_v3  ;;  %v761_v4 = vunpack.i.l.bf16 %v760_v3 }
 0x49a   :  { %v610_v7 = vsel %vm609_vm7, %v608_v5, %v761_v4  ;;  %v613_v8 = vsel %vm609_vm7, %v612_v6, %v762_v0 }
 0x49b   :  { %v666_v9 = vpack.c.bf16 %v613_v8, %v610_v7 }
 0x49d   :  { %v625_v10 = vrot.slane %v666_v9, %v994_v18 }
 0x49f   :  { %667 = vst.sshfl [vmem:[#allocation8] sm:$0x5 pattern:$0x73625140] %v625_v10 }
 0x4a0   :  { %855 = shalt.err (!%p852_p0)
}
 0x4a1   :  { %s856_s14 = scalar_lea.hbm %s1057_s5, 32 }
 0x4a2   :  { %p857_p1 = scmp.ne.s32.totalorder %s1057_s5, %s856_s14  ;;  %p860_p2 = scmp.lt.u32.totalorder %s856_s14, %s1057_s5 }
 0x4a4   :  { %p862_p3 = pnand %p860_p2, %p857_p1 }
 0x4a6   :  { %865 = shalt.err (!%p862_p3)
}
 0x4a7   :  { %644 = dma.vmem_to_hbm [thread:$0]  %s642_s10, 32, %s1057_s5, [#allocation4]  }
 0x4a8   :  { %870 = dma.done.wait [#allocation4], 32  }
 0x4a9   :  { %871 = vsyncadd [#allocation4], 4294967264 }
 0x4aa   :  { %648 = vsyncpa [#allocation3], 1 }
 0x4ab   :  { %649 = vsyncpa [#allocation6], 1 }
 0x4ac   :  { %650 = vsyncpa [#allocation4], 1 }

</bundles_post_ra>
